<compile_context>
chip_gen: v7x
topology: tpu7x:2x2x1
jax: 0.10.0
libtpu: 0.0.40
codegen_flags: <defaults>
</compile_context>

<pallas_src>
import functools
import math

import jax
import jax.numpy as jnp
from jax.experimental import pallas as pl
from jax.experimental.pallas import tpu as pltpu


# ------------------------------ small helpers --------------------------------

def _round_up(v, m):
    return (v + m - 1) // m * m


def _pad_axis(a, axis, mult):
    size = a.shape[axis]
    pad = (-size) % mult
    if pad == 0:
        return a
    widths = [(0, 0)] * a.ndim
    widths[axis] = (0, pad)
    return jnp.pad(a, widths)


def _base_act_name(act_layer):
    if act_layer in ("relu", "reglu"):
        return "relu"
    if act_layer in ("gelu", "geglu"):
        return "gelu"
    if act_layer in ("swish", "swiglu"):
        return "swish"
    raise ValueError(f"activation={act_layer} is not supported.")


def _apply_act(h, act):
    if act == "swish":
        return h * jax.nn.sigmoid(h)
    if act == "gelu":
        return jax.nn.gelu(h, approximate=False)   # torch.nn.GELU default (erf)
    if act == "relu":
        return jnp.maximum(h, 0.0)
    raise ValueError(f"activation={act} is not supported.")


# ------------------------------- Pallas kernels -------------------------------

def _mlp_kernel(x_ref, w1_ref, b1_ref, w2_ref, b2_ref, o_ref, acc_ref, *,
                act, mxu_dtype):
    j = pl.program_id(1)

    @pl.when(j == 0)
    def _():
        acc_ref[...] = jnp.zeros_like(acc_ref)

    xb = x_ref[...].astype(mxu_dtype)
    # fc1 on the current hidden block: (TM, K) @ (K, TH), f32 accumulation.
    h = jnp.dot(xb, w1_ref[...], preferred_element_type=jnp.float32) + b1_ref[...]
    h = _apply_act(h, act)
    # fc2 partial product for this hidden block: (TM, TH) @ (TH, N) -> f32 acc.
    acc_ref[...] += jnp.dot(h.astype(mxu_dtype), w2_ref[...],
                            preferred_element_type=jnp.float32)

    @pl.when(j == pl.num_programs(1) - 1)
    def _():
        o_ref[...] = (acc_ref[...] + b2_ref[...]).astype(o_ref.dtype)


def _mlp_glu_kernel(x_ref, w1v_ref, b1v_ref, w1g_ref, b1g_ref, w2_ref, b2_ref,
                    o_ref, acc_ref, *, act, mxu_dtype):
    j = pl.program_id(1)

    @pl.when(j == 0)
    def _():
        acc_ref[...] = jnp.zeros_like(acc_ref)

    xb = x_ref[...].astype(mxu_dtype)
    # Two dots against pre-split value/gate halves (halves the live f32 intermediate).
    val = jnp.dot(xb, w1v_ref[...], preferred_element_type=jnp.float32) + b1v_ref[...]
    gate = jnp.dot(xb, w1g_ref[...], preferred_element_type=jnp.float32) + b1g_ref[...]
    h = val * _apply_act(gate, act)
    acc_ref[...] += jnp.dot(h.astype(mxu_dtype), w2_ref[...],
                            preferred_element_type=jnp.float32)

    @pl.when(j == pl.num_programs(1) - 1)
    def _():
        o_ref[...] = (acc_ref[...] + b2_ref[...]).astype(o_ref.dtype)


# ------------------------------ tile selection --------------------------------

_VMEM_BUDGET = 24 * 1024 * 1024      # tile plan target
_VMEM_LIMIT = 32 * 1024 * 1024       # explicit scoped-VMEM limit (ok on v5e/v6e/v7x)


def _choose_tiles(M, Kp, Hp, Np, glu, x_bytes):
    """Pick (TM, TH) from an explicit VMEM byte budget."""
    # Hidden block: largest multiple of 128 <= 512 that divides Hp.
    TH = min(512, Hp)
    while Hp % TH:
        TH -= 128

    def plan_bytes(tm, th):
        nw1 = 2 if glu else 1
        b = 2 * tm * Kp * x_bytes              # x tile (double buffered)
        b += 2 * nw1 * Kp * th * 2             # fc1 weight block(s), bf16
        b += 2 * nw1 * th * 4                  # fc1 bias block(s)
        b += 2 * th * Np * 2                   # fc2 weight block, bf16
        b += 2 * Np * 4                        # fc2 bias
        b += 2 * tm * Np * x_bytes             # output tile
        b += tm * Np * 4                       # f32 accumulator scratch
        b += (2 if glu else 1) * tm * th * 4   # live f32 fc1 intermediate
        return b

    # Row tile: prefer >=4 row steps once M is big enough (pipelining / megacore),
    # cap at 1024 rows, shrink until the plan fits the byte budget.
    row_cap = max(64, M // 4) if M >= 256 else M
    TM = 8
    for cand in (1024, 512, 256, 128, 64, 32, 16, 8):
        if cand <= row_cap and plan_bytes(cand, TH) <= _VMEM_BUDGET:
            TM = cand
            break
    while TH > 128 and plan_bytes(TM, TH) > _VMEM_BUDGET:
        TH -= 128
        while Hp % TH:
            TH -= 128
    return TM, TH


# --------------------------------- wrapper ------------------------------------

def pallas_mlp(x, w1, b1, w2, b2, *, act_layer="swish", mxu_dtype=jnp.bfloat16):
    """Fused MLP forward: fc2( act_or_GLU( fc1(x) ) ); dropout(p=0) omitted.

    x  : (..., in_features)
    w1 : (in_features, hidden)          or (in_features, 2*hidden) when 'glu' in act_layer
    b1 : (hidden,)                      or (2*hidden,)
    w2 : (hidden, out_features)
    b2 : (out_features,)

    Matmuls run in `mxu_dtype` (bf16 by default) with f32 accumulation; bias adds
    and the activation run in f32.  Output dtype == x.dtype.
    """
    glu = "glu" in act_layer
    act = _base_act_name(act_layer)

    orig_shape = x.shape
    K = orig_shape[-1]
    M = math.prod(orig_shape[:-1])
    H = w2.shape[0]           # hidden_features
    N = w2.shape[1]           # out_features
    out_dtype = x.dtype

    assert w1.shape == (K, 2 * H if glu else H)
    assert b1.shape == (w1.shape[1],)
    assert b2.shape == (N,)

    x2 = x.reshape(M, K)

    if glu:
        w1v, w1g = w1[:, :H], w1[:, H:]      # value half, gate half
        b1v, b1g = b1[:H], b1[H:]
    else:
        w1v, b1v = w1, b1
        w1g = b1g = None

    # Zero-pad channel dims to lane multiples (padding never changes the result:
    # padded fc1 columns feed padded (zero) fc2 rows, padded fc2 columns are sliced off).
    Kp = _round_up(K, 128)
    Hp = _round_up(H, 128)
    Np = _round_up(N, 128)

    x2 = _pad_axis(x2, 1, 128)
    w1v = _pad_axis(_pad_axis(w1v, 0, 128), 1, 128)
    b1v = _pad_axis(b1v, 0, 128)
    w2p = _pad_axis(_pad_axis(w2, 0, 128), 1, 128)
    b2p = _pad_axis(b2, 0, 128)
    if glu:
        w1g = _pad_axis(_pad_axis(w1g, 0, 128), 1, 128)
        b1g = _pad_axis(b1g, 0, 128)

    TM, TH = _choose_tiles(M, Kp, Hp, Np, glu, x2.dtype.itemsize)
    Mp = _round_up(M, TM)
    x2 = _pad_axis(x2, 0, TM)
    grid = (Mp // TM, Hp // TH)

    # bf16 MXU operands; biases stay f32.
    w1v = w1v.astype(mxu_dtype)
    w2p = w2p.astype(mxu_dtype)
    b1v = b1v.reshape(1, Hp).astype(jnp.float32)
    b2p = b2p.reshape(1, Np).astype(jnp.float32)
    if glu:
        w1g = w1g.astype(mxu_dtype)
        b1g = b1g.reshape(1, Hp).astype(jnp.float32)

    # in_specs / args (hidden axis j streams fc1 columns and fc2 rows).
    in_specs = [
        pl.BlockSpec((TM, Kp), lambda i, j: (i, 0)),      # x row tile (resident over j)
        pl.BlockSpec((Kp, TH), lambda i, j: (0, j)),      # fc1 weight (value half) block
        pl.BlockSpec((1, TH), lambda i, j: (0, j)),       # fc1 bias (value half)
    ]
    args = [x2, w1v, b1v]
    if glu:
        in_specs += [
            pl.BlockSpec((Kp, TH), lambda i, j: (0, j)),  # fc1 weight (gate half) block
            pl.BlockSpec((1, TH), lambda i, j: (0, j)),   # fc1 bias (gate half)
        ]
        args += [w1g, b1g]
    in_specs += [
        pl.BlockSpec((TH, Np), lambda i, j: (j, 0)),      # fc2 weight block
        pl.BlockSpec((1, Np), lambda i, j: (0, 0)),       # fc2 bias (tiny, constant)
    ]
    args += [w2p, b2p]

    kernel = functools.partial(_mlp_glu_kernel if glu else _mlp_kernel,
                               act=act, mxu_dtype=mxu_dtype)

    flops = 2 * M * K * ((2 * H) if glu else H) + 2 * M * H * N
    transcendentals = M * H if act in ("swish", "gelu") else 0
    bytes_accessed = (x2.size * x2.dtype.itemsize
                      + (w1v.size + w2p.size) * 2
                      + (0 if not glu else w1g.size * 2)
                      + (b1v.size + b2p.size + (b1g.size if glu else 0)) * 4
                      + Mp * Np * jnp.dtype(out_dtype).itemsize)

    out = pl.pallas_call(
        kernel,
        out_shape=jax.ShapeDtypeStruct((Mp, Np), out_dtype),
        grid_spec=pltpu.PrefetchScalarGridSpec(
            num_scalar_prefetch=0,
            grid=grid,
            in_specs=in_specs,
            out_specs=pl.BlockSpec((TM, Np), lambda i, j: (i, 0)),
            scratch_shapes=[pltpu.VMEM((TM, Np), jnp.float32)],
        ),
        compiler_params=pltpu.CompilerParams(
            dimension_semantics=("parallel", "arbitrary"),
            vmem_limit_bytes=_VMEM_LIMIT,
        ),
        cost_estimate=pl.CostEstimate(
            flops=int(flops),
            transcendentals=int(transcendentals),
            bytes_accessed=int(bytes_accessed),
        ),
    )(*args)

    out = out[:M, :N]
    return out.reshape(*orig_shape[:-1], N)


# ------------------------------ plain-JAX reference ---------------------------

def _ref_mlp(x, w1, b1, w2, b2, *, act_layer="swish"):
    hp = jax.lax.Precision.HIGHEST
    glu = "glu" in act_layer
    act = _base_act_name(act_layer)
    h = jnp.dot(x, w1, precision=hp) + b1
    if glu:
        val, gate = jnp.split(h, 2, axis=-1)
        h = val * _apply_act(gate, act)
    else:
        h = _apply_act(h, act)
    return jnp.dot(h, w2, precision=hp) + b2


# ----------------------------------- main --------------------------------------

if __name__ == "__main__":
    key = jax.random.PRNGKey(0)
    ks = jax.random.split(key, 12)

    def check(name, x, w1, b1, w2, b2, act_layer):
        fwd = jax.jit(functools.partial(pallas_mlp, act_layer=act_layer))
        out = fwd(x, w1, b1, w2, b2)
        jax.block_until_ready(out)
        ref = _ref_mlp(x, w1, b1, w2, b2, act_layer=act_layer)
        assert out.shape == ref.shape, f"{name}: shape {out.shape} vs {ref.shape}"
        assert out.dtype == x.dtype
        err = float(jnp.max(jnp.abs(out - ref)))
        assert jnp.allclose(out, ref, atol=2e-2, rtol=2e-2), \
            f"{name} mismatch (max abs err {err})"

    # 1) Default path: fc1 = Linear + SiLU ('swish'); lane-aligned dims.
    B, S, C, Hdn = 2, 128, 128, 512
    x = jax.random.normal(ks[0], (B, S, C), dtype=jnp.float32)
    w1 = 0.05 * jax.random.normal(ks[1], (C, Hdn), dtype=jnp.float32)
    b1 = 0.02 * jax.random.normal(ks[2], (Hdn,), dtype=jnp.float32)
    w2 = 0.05 * jax.random.normal(ks[3], (Hdn, C), dtype=jnp.float32)
    b2 = 0.02 * jax.random.normal(ks[4], (C,), dtype=jnp.float32)
    check("swish", x, w1, b1, w2, b2, "swish")

    # 2) GLU path ('swiglu'): proj = Linear(in, 2*hidden); hidden grid has 2 steps.
    Hg = 1024
    w1g_ = 0.05 * jax.random.normal(ks[5], (C, 2 * Hg), dtype=jnp.float32)
    b1g_ = 0.02 * jax.random.normal(ks[6], (2 * Hg,), dtype=jnp.float32)
    w2g_ = 0.05 * jax.random.normal(ks[7], (Hg, C), dtype=jnp.float32)
    check("swiglu", x, w1g_, b1g_, w2g_, b2, "swiglu")

    # 3) Misaligned dims exercise the lane-padding path (in=96, hidden=200, out=72).
    Bm, Sm, Cm, Hm, Nm = 2, 50, 96, 200, 72
    xm = jax.random.normal(ks[8], (Bm, Sm, Cm), dtype=jnp.float32)
    w1m = 0.05 * jax.random.normal(ks[9], (Cm, Hm), dtype=jnp.float32)
    b1m = 0.02 * jax.random.normal(ks[10], (Hm,), dtype=jnp.float32)
    w2m = 0.05 * jax.random.normal(ks[11], (Hm, Nm), dtype=jnp.float32)
    b2m = 0.02 * jax.random.normal(ks[4], (Nm,), dtype=jnp.float32)
    check("swish-padded", xm, w1m, b1m, w2m, b2m, "swish")

    print("KERNEL_OK")
</pallas_src>

<mosaic_0001>
module attributes {stable_mosaic.version = 11 : i64} {
  func.func @_mlp_kernel(%arg0: i32, %arg1: i32, %arg2: memref<64x128xf32, #tpu.memory_space<vmem>>, %arg3: memref<128x512xbf16, #tpu.memory_space<vmem>>, %arg4: memref<1x512xf32, #tpu.memory_space<vmem>>, %arg5: memref<512x128xbf16, #tpu.memory_space<vmem>>, %arg6: memref<1x128xf32, #tpu.memory_space<vmem>>, %arg7: memref<64x128xf32, #tpu.memory_space<vmem>>, %arg8: memref<64x128xf32, #tpu.memory_space<vmem>>) attributes {dimension_semantics = [#tpu.dimension_semantics<parallel>, #tpu.dimension_semantics<arbitrary>], iteration_bounds = array<i64: 4, 1>, scalar_prefetch = 0 : i64, scratch_operands = 1 : i64, tpu.core_type = #tpu.core_type<tc>, window_params = [{transform_indices = @transform_0, window_bounds = array<i64: 64, 128>}, {transform_indices = @transform_1, window_bounds = array<i64: 128, 512>}, {transform_indices = @transform_2, window_bounds = array<i64: 1, 512>}, {transform_indices = @transform_3, window_bounds = array<i64: 512, 128>}, {pipeline_mode = #tpu.pipeline_mode<synchronous>, transform_indices = @transform_4, window_bounds = array<i64: 1, 128>}, {transform_indices = @transform_5, window_bounds = array<i64: 64, 128>}]} {
    %c0_i32 = arith.constant 0 : i32
    %0 = arith.cmpi eq, %arg1, %c0_i32 : i32
    %1 = arith.extui %0 : i1 to i32
    %c0_i32_0 = arith.constant 0 : i32
    %2 = arith.cmpi ne, %1, %c0_i32_0 : i32
    scf.if %2 {
      %cst_16 = arith.constant 0.000000e+00 : f32
      %25 = vector.broadcast %cst_16 : f32 to vector<64x128xf32>
      %c0_17 = arith.constant 0 : index
      %c0_18 = arith.constant 0 : index
      %26 = vector.load %arg8[%c0_17, %c0_18] : memref<64x128xf32, #tpu.memory_space<vmem>>, vector<64x128xf32>
      tpu.vector_store %arg8[%c0_17, %c0_18], %25 {strides = array<i32>} : memref<64x128xf32, #tpu.memory_space<vmem>>, vector<64x128xf32>,
    } else {
    }
    %c0 = arith.constant 0 : index
    %c0_1 = arith.constant 0 : index
    %3 = vector.load %arg2[%c0, %c0_1] : memref<64x128xf32, #tpu.memory_space<vmem>>, vector<64x128xf32>
    %4 = arith.truncf %3 : vector<64x128xf32> to vector<64x128xbf16>
    %c0_2 = arith.constant 0 : index
    %c0_3 = arith.constant 0 : index
    %5 = vector.load %arg3[%c0_2, %c0_3] : memref<128x512xbf16, #tpu.memory_space<vmem>>, vector<128x512xbf16>
    %cst = arith.constant dense<0.000000e+00> : vector<64x512xf32>
    %6 = tpu.matmul %4, %5, %cst {dimension_numbers = #tpu.dot_dimension_numbers<[1], [0], [0], [1], [0, 0, 1, 1], [], []>} : vector<64x128xbf16>, vector<128x512xbf16>, vector<64x512xf32> -> vector<64x512xf32>
    %c0_4 = arith.constant 0 : index
    %c0_5 = arith.constant 0 : index
    %7 = vector.load %arg4[%c0_4, %c0_5] : memref<1x512xf32, #tpu.memory_space<vmem>>, vector<1x512xf32>
    %8 = vector.broadcast %7 : vector<1x512xf32> to vector<64x512xf32>
    %9 = arith.addf %6, %8 : vector<64x512xf32>
    %10 = arith.negf %9 : vector<64x512xf32>
    %11 = math.exp %10 : vector<64x512xf32>
    %cst_6 = arith.constant 1.000000e+00 : f32
    %12 = vector.broadcast %cst_6 : f32 to vector<64x512xf32>
    %13 = arith.addf %12, %11 : vector<64x512xf32>
    %14 = arith.divf %12, %13 : vector<64x512xf32>
    %15 = arith.mulf %9, %14 : vector<64x512xf32>
    %c0_7 = arith.constant 0 : index
    %c0_8 = arith.constant 0 : index
    %16 = vector.load %arg8[%c0_7, %c0_8] : memref<64x128xf32, #tpu.memory_space<vmem>>, vector<64x128xf32>
    %17 = arith.truncf %15 : vector<64x512xf32> to vector<64x512xbf16>
    %c0_9 = arith.constant 0 : index
    %c0_10 = arith.constant 0 : index
    %18 = vector.load %arg5[%c0_9, %c0_10] : memref<512x128xbf16, #tpu.memory_space<vmem>>, vector<512x128xbf16>
    %cst_11 = arith.constant dense<0.000000e+00> : vector<64x128xf32>
    %19 = tpu.matmul %17, %18, %cst_11 {dimension_numbers = #tpu.dot_dimension_numbers<[1], [0], [0], [1], [0, 0, 1, 1], [], []>} : vector<64x512xbf16>, vector<512x128xbf16>, vector<64x128xf32> -> vector<64x128xf32>
    %20 = arith.addf %16, %19 : vector<64x128xf32>
    %c0_12 = arith.constant 0 : index
    %c0_13 = arith.constant 0 : index
    %21 = vector.load %arg8[%c0_12, %c0_13] : memref<64x128xf32, #tpu.memory_space<vmem>>, vector<64x128xf32>
    tpu.vector_store %arg8[%c0_12, %c0_13], %20 {strides = array<i32>} : memref<64x128xf32, #tpu.memory_space<vmem>>, vector<64x128xf32>,
    %c0_i32_14 = arith.constant 0 : i32
    %22 = arith.cmpi eq, %arg1, %c0_i32_14 : i32
    %23 = arith.extui %22 : i1 to i32
    %c0_i32_15 = arith.constant 0 : i32
    %24 = arith.cmpi ne, %23, %c0_i32_15 : i32
    scf.if %24 {
      %c0_16 = arith.constant 0 : index
      %c0_17 = arith.constant 0 : index
      %25 = vector.load %arg8[%c0_16, %c0_17] : memref<64x128xf32, #tpu.memory_space<vmem>>, vector<64x128xf32>
      %c0_18 = arith.constant 0 : index
      %c0_19 = arith.constant 0 : index
      %26 = vector.load %arg6[%c0_18, %c0_19] : memref<1x128xf32, #tpu.memory_space<vmem>>, vector<1x128xf32>
      %27 = vector.broadcast %26 : vector<1x128xf32> to vector<64x128xf32>
      %28 = arith.addf %25, %27 : vector<64x128xf32>
      %c0_20 = arith.constant 0 : index
      %c0_21 = arith.constant 0 : index
      %29 = vector.load %arg7[%c0_20, %c0_21] : memref<64x128xf32, #tpu.memory_space<vmem>>, vector<64x128xf32>
      tpu.vector_store %arg7[%c0_20, %c0_21], %28 {strides = array<i32>} : memref<64x128xf32, #tpu.memory_space<vmem>>, vector<64x128xf32>,
    } else {
    }
    return
  }
  func.func @transform_0(%arg0: i32, %arg1: i32) -> (i32, i32) {
    %c0_i32 = arith.constant 0 : i32
    %c0_i32_0 = arith.constant 0 : i32
    return %arg0, %c0_i32 : i32, i32
  }
  func.func @transform_1(%arg0: i32, %arg1: i32) -> (i32, i32) {
    %c0_i32 = arith.constant 0 : i32
    %c0_i32_0 = arith.constant 0 : i32
    return %c0_i32, %arg1 : i32, i32
  }
  func.func @transform_2(%arg0: i32, %arg1: i32) -> (i32, i32) {
    %c0_i32 = arith.constant 0 : i32
    %c0_i32_0 = arith.constant 0 : i32
    return %c0_i32, %arg1 : i32, i32
  }
  func.func @transform_3(%arg0: i32, %arg1: i32) -> (i32, i32) {
    %c0_i32 = arith.constant 0 : i32
    %c0_i32_0 = arith.constant 0 : i32
    return %arg1, %c0_i32 : i32, i32
  }
  func.func @transform_4(%arg0: i32, %arg1: i32) -> (i32, i32) {
    %c0_i32 = arith.constant 0 : i32
    %c0_i32_0 = arith.constant 0 : i32
    %c0_i32_1 = arith.constant 0 : i32
    return %c0_i32, %c0_i32_0 : i32, i32
  }
  func.func @transform_5(%arg0: i32, %arg1: i32) -> (i32, i32) {
    %c0_i32 = arith.constant 0 : i32
    %c0_i32_0 = arith.constant 0 : i32
    return %arg0, %c0_i32 : i32, i32
  }
}

</mosaic_0001>

<bundles_post_ra>
// kernel: pallas_mlp.1
= control target key start
LH: loop header
LB: loop body
LE: loop exit
PB: predicated region body
PF: predicated region fallthrough
CT: control target
= control target key end

     0   :  { %10 = vsyncpa [#allocation4], 0  ;;  %s2629_s0 = inlined_call_operand.vmem [shape: f32[256,128], index: 0, kind: input, shape index: {}]   ;;  %s2630_s1 = inlined_call_operand.vmem [shape: bf16[128,512], index: 1, kind: input, shape index: {}]   ;;  %s2631_s2 = inlined_call_operand.vmem [shape: f32[1,512], index: 2, kind: input, shape index: {}]   ;;  %s2632_s3 = inlined_call_operand.vmem [shape: bf16[512,128], index: 3, kind: input, shape index: {}]   ;;  %s2633_s4 = inlined_call_operand.vmem [shape: f32[1,128], index: 4, kind: input, shape index: {}]   ;;  %s2634_s5 = inlined_call_operand.hbm [shape: f32[256,128], index: 5, kind: output, shape index: {}]  }
   0x1   :  { %12 = vsyncpa [#allocation4 + $0x1], 0  ;;  %s2070_s18 = smov 0   ;;  %s2072_s19 = smov 0  }
   0x2   :  { %s2074_s20 = smov 0   ;;  %s2076_s21 = smov 0  }
   0x3   :  { %s2078_s22 = smov 0   ;;  %s2080_s23 = smov 0  }
   0x4 LB: > { %s1496_s24 = sadd.s32 4294967295, %s2034_s23   ;;  %s1497_s25 = sadd.s32 4294967294, %s2034_s23   ;;  %s2034_s23 = sphi %s2080_s23, %s18_s23   ;;  %s2030_s22 = sphi %s2078_s22, %s2641_s22   ;;  %s2026_s21 = sphi %s2076_s21, %s2640_s21   ;;  %s2022_s20 = sphi %s2074_s20, %s2639_s20   ;;  %s2018_s19 = sphi %s2072_s19, %s2638_s19   ;;  %s2014_s18 = sphi %s2070_s18, %s2637_s18  }
   0x5   : > { %s30_s26 = sadd.s32 1, %s2030_s22  ;;  %s162_s27 = sadd.s32 1, %s2022_s20 }
   0x6   : > { %p32_p0 = scmp.ge.s32.totalorder %s30_s26, 4  ;;  %p172_p1 = scmp.ne.s32.totalorder %s2022_s20, %s2018_s19 }
   0x7   : > { %p173_p2 = scmp.eq.s32.totalorder %s1496_s24, 3  ;;  %p178_p3 = scmp.ne.s32.totalorder %s2018_s19, %s2014_s18 }
   0x8   : > { %s2643_s26 = smov (%p32_p0, %s30_s26), 0  ;;  %p179_p5 = scmp.eq.s32.totalorder %s1497_s25, 3 }
   0x9   : > { %p2110_p4 = por %p173_p2, %p172_p1  ;;  %s159_s29 = ssub.s32 %s2030_s22, %s2643_s26 }
   0xa   : > { %p1503_p6 = scmp.ge.s32.totalorder %s2034_s23, 1  ;;  %p160_p7 = scmp.eq.s32.totalorder %s159_s29, 0 }
   0xb   : > { %p2117_p8 = por %p179_p5, %p178_p3  ;;  %p235_p9 = scmp.lt.s32.totalorder %s2034_s23, 5 }
   0xc   : > { %s2123_s6 = scalar_select %p160_p7, %s2022_s20, %s162_s27  }
   0xd   : > { %p236_p10 = pnand %p1503_p6, %p235_p9 }
   0xe   : > { %v1748_v0 = vld [vmem:[%s2630_s1 + $0x4] ss:$16 sps:$4 sm:$0xff] (!%p236_p10)   ;;  %v1750_v1 = vld [vmem:[%s2630_s1 + $0xc] ss:$16 sps:$4 sm:$0xff] (!%p236_p10)   ;;  %v2036_v2 = vmov (!%p236_p10), 0   ;;  %s1505_s27 = sshll.u32 (!%p236_p10), %s2026_s21, 3 }
   0xf   : > { %239 = sbr.rel (%p236_p10) target bundleno = 586 (0x24a), region = 40  ;;  %572 = vmatprep.mubr.bf16.mxu0 (!%p236_p10), %v2036_v2  ;;  %645 = vmatprep.mubr.bf16.mxu1 (!%p236_p10), %v2036_v2  ;;  %v1752_v3 = vld [vmem:[%s2630_s1] ss:$16 sps:$4 sm:$0xff] (!%p236_p10)   ;;  %v1753_v4 = vld [vmem:[%s2630_s1 + $0x8] ss:$16 sps:$4 sm:$0xff] (!%p236_p10)   ;;  %p278_p11 = scmp.lt.s32.totalorder (!%p236_p10), %s1505_s27, 31 }
  0x10   : > { %540 = vmatprep.subr.bf16.mxu0 (!%p236_p10), %v1748_v0  ;;  %613 = vmatprep.subr.bf16.mxu1 (!%p236_p10), %v1750_v1  ;;  %v1754_v5 = vld [vmem:[%s2630_s1 + $0x24] ss:$16 sps:$4 sm:$0xff] (!%p236_p10)   ;;  %v1756_v6 = vld [vmem:[%s2630_s1 + $0x2c] ss:$16 sps:$4 sm:$0xff] (!%p236_p10)   ;;  %v1758_v7 = vld [vmem:[%s2630_s1 + $0x20] ss:$16 sps:$4 sm:$0xff] (!%p236_p10)  }
  0x11   : > { %541 = vmatpush1.bf16.msra.mxu0 (!%p236_p10), %v1752_v3  ;;  %614 = vmatpush1.bf16.msra.mxu1 (!%p236_p10), %v1753_v4  ;;  %v1759_v8 = vld [vmem:[%s2630_s1 + $0x28] ss:$16 sps:$4 sm:$0xff] (!%p236_p10)   ;;  %v1760_v9 = vld [vmem:[%s2630_s1 + $0x44] ss:$16 sps:$4 sm:$0xff] (!%p236_p10)   ;;  %v1762_v10 = vld [vmem:[%s2630_s1 + $0x4c] ss:$16 sps:$4 sm:$0xff] (!%p236_p10)  }
  0x12   : > { %542 = vmatprep.subr.bf16.mxu0 (!%p236_p10), %v1754_v5  ;;  %615 = vmatprep.subr.bf16.mxu1 (!%p236_p10), %v1756_v6  ;;  %v1764_v11 = vld [vmem:[%s2630_s1 + $0x40] ss:$16 sps:$4 sm:$0xff] (!%p236_p10)   ;;  %v1765_v12 = vld [vmem:[%s2630_s1 + $0x48] ss:$16 sps:$4 sm:$0xff] (!%p236_p10)   ;;  %v1766_v13 = vld [vmem:[%s2630_s1 + $0x64] ss:$16 sps:$4 sm:$0xff] (!%p236_p10)  }
  0x13   : > { %v1768_v14 = vld [vmem:[%s2630_s1 + $0x6c] ss:$16 sps:$4 sm:$0xff] (!%p236_p10)   ;;  %v1770_v15 = vld [vmem:[%s2630_s1 + $0x60] ss:$16 sps:$4 sm:$0xff] (!%p236_p10)   ;;  %v1771_v16 = vld [vmem:[%s2630_s1 + $0x68] ss:$16 sps:$4 sm:$0xff] (!%p236_p10)  }
  0x14   : > { %v1772_v17 = vld [vmem:[%s2630_s1 + $0x84] ss:$16 sps:$4 sm:$0xff] (!%p236_p10)   ;;  %v1774_v18 = vld [vmem:[%s2630_s1 + $0x8c] ss:$16 sps:$4 sm:$0xff] (!%p236_p10)   ;;  %v1776_v19 = vld [vmem:[%s2630_s1 + $0x80] ss:$16 sps:$4 sm:$0xff] (!%p236_p10)  }
  0x15   : > { %543 = vmatpush1.bf16.msra.mxu0 (!%p236_p10), %v1758_v7  ;;  %616 = vmatpush1.bf16.msra.mxu1 (!%p236_p10), %v1759_v8  ;;  %v1777_v20 = vld [vmem:[%s2630_s1 + $0x88] ss:$16 sps:$4 sm:$0xff] (!%p236_p10)   ;;  %v1778_v21 = vld [vmem:[%s2630_s1 + $0xa4] ss:$16 sps:$4 sm:$0xff] (!%p236_p10)   ;;  %v1780_v22 = vld [vmem:[%s2630_s1 + $0xac] ss:$16 sps:$4 sm:$0xff] (!%p236_p10)  }
  0x16   : > { %544 = vmatprep.subr.bf16.mxu0 %v1760_v9  ;;  %617 = vmatprep.subr.bf16.mxu1 %v1762_v10  ;;  %s2645_s27 = smov (!%p278_p11, %s1505_s27), 31  ;;  %v1782_v23 = vld [vmem:[%s2630_s1 + $0xa0] ss:$16 sps:$4 sm:$0xff]   ;;  %v1783_v24 = vld [vmem:[%s2630_s1 + $0xa8] ss:$16 sps:$4 sm:$0xff]   ;;  %s274_s8 = sand.u32 1, %s2018_s19  }
  0x17   : > { %s1506_s12 = sshll.u32 %s2645_s27, 3  ;;  %v1784_v25 = vld [vmem:[%s2630_s1 + $0xc4] ss:$16 sps:$4 sm:$0xff]   ;;  %v1786_v26 = vld [vmem:[%s2630_s1 + $0xcc] ss:$16 sps:$4 sm:$0xff]   ;;  %s1504_s9 = sshll.u32 %s274_s8, 6 }
  0x18   : > { %v1788_v27 = vld [vmem:[%s2630_s1 + $0xc0] ss:$16 sps:$4 sm:$0xff]   ;;  %v1789_v28 = vld [vmem:[%s2630_s1 + $0xc8] ss:$16 sps:$4 sm:$0xff]   ;;  %v1790_v29 = vld [vmem:[%s2630_s1 + $0xe4] ss:$16 sps:$4 sm:$0xff]   ;;  %s2218_s10 = scalar_lea.vmem %s2629_s0, %s1506_s12 }
  0x19   : > { %545 = vmatpush1.bf16.msra.mxu0 %v1764_v11  ;;  %618 = vmatpush1.bf16.msra.mxu1 %v1765_v12  ;;  %v1792_v30 = vld [vmem:[%s2630_s1 + $0xec] ss:$16 sps:$4 sm:$0xff]   ;;  %v1794_v31 = vld [vmem:[%s2630_s1 + $0xe0] ss:$16 sps:$4 sm:$0xff]   ;;  %v1795_v32 = vld [vmem:[%s2630_s1 + $0xe8] ss:$16 sps:$4 sm:$0xff]  }
  0x1a   : > { %546 = vmatprep.subr.bf16.mxu0 %v1766_v13  ;;  %619 = vmatprep.subr.bf16.mxu1 %v1768_v14  ;;  %v314_v33 = vld [vmem:[%s2218_s10] sm:$0xff]  ;;  %v315_v34 = vld [vmem:[%s2218_s10 + $0x8] sm:$0xff]  ;;  %v316_v36 = vld [vmem:[%s2218_s10 + $0x10] sm:$0xff]  ;;  %v360_v13 = vlaneseq  ;;  %s2555_s13 = scalar_lea.vmem [#allocation3], %s1504_s9  ;;  %s1609_s14 = sshll.u32 %s2026_s21, 10 }
  0x1b   : > { %v322_v35 = vpack.c.bf16 %v315_v34, %v314_v33  ;;  %v317_v37 = vld [vmem:[%s2218_s10 + $0x18] sm:$0xff]  ;;  %v318_v39 = vld [vmem:[%s2218_s10 + $0x20] sm:$0xff]  ;;  %v319_v40 = vld [vmem:[%s2218_s10 + $0x28] sm:$0xff]  ;;  %s1384_s15 = sshll.u32 %s2555_s13, 4  ;;  %s2574_s12 = scalar_lea.hbm %s2634_s5, %s1609_s14  ;;  %s2576_s15 = int_to_ptr.vmem [resolvable:$true] %s1384_s15 }
  0x1c   : > { %v323_v38 = vpack.c.bf16 %v317_v37, %v316_v36  ;;  %v324_v41 = vpack.c.bf16 %v319_v40, %v318_v39  ;;  %v320_v42 = vld [vmem:[%s2218_s10 + $0x30] sm:$0xff]  ;;  %v321_v43 = vld [vmem:[%s2218_s10 + $0x38] sm:$0xff]  ;;  %v1796_v45 = vld [vmem:[%s2632_s3 + $0x40] sm:$0xff]   ;;  %v361_v14 = vshrl.u32 %v360_v13, 7  ;;  %s2583_s21 = scalar_lea.sflag [#allocation4], %s274_s8  ;;  %s1956_s24 = scalar_lea.vmem %s2576_s15, 1024 }
  0x1d   : > { %547 = vmatpush1.bf16.msra.mxu0 %v1770_v15  ;;  %620 = vmatpush1.bf16.msra.mxu1 %v1771_v16  ;;  %v325_v44 = vpack.c.bf16 %v321_v43, %v320_v42  ;;  %v1797_v46 = vld [vmem:[%s2632_s3 + $0xc0] sm:$0xff]   ;;  %v1800_v49 = vld [vmem:[%s2632_s3 + $0x48] sm:$0xff]   ;;  %v1804_v53 = vld [vmem:[%s2632_s3 + $0x50] sm:$0xff]   ;;  %p1957_p12 = scmp.ne.s32.totalorder %s2576_s15, %s1956_s24  ;;  %s2037_s25 = smov [#allocation3]  }
  0x1e   : > { %548 = vmatprep.subr.bf16.mxu0 %v1772_v17  ;;  %621 = vmatprep.subr.bf16.mxu1 %v1774_v18  ;;  %v1798_v47 = vld [vmem:[%s2632_s3] sm:$0xff]   ;;  %v1801_v50 = vld [vmem:[%s2632_s3 + $0xc8] sm:$0xff]   ;;  %v1805_v54 = vld [vmem:[%s2632_s3 + $0xd0] sm:$0xff]   ;;  %v362_v15 = vsub.s32 0, %v361_v14  ;;  %v370_v16 = vsub.s32 2, %v361_v14  ;;  %v366_v18 = vsub.s32 1, %v361_v14 }
  0x1f   : > { %v1799_v48 = vld [vmem:[%s2632_s3 + $0x80] sm:$0xff]   ;;  %v1802_v51 = vld [vmem:[%s2632_s3 + $0x8] sm:$0xff]   ;;  %v1806_v55 = vld [vmem:[%s2632_s3 + $0x10] sm:$0xff]   ;;  %p1958_p13 = pnand %p1957_p12, %p2110_p4  ;;  %s1960_s29 = sshll.u32 %s2037_s25, 4  ;;  %s1961_s29 = int_to_ptr.vmem [resolvable:$false] %s1960_s29 }
  0x20   : > { %v1803_v52 = vld [vmem:[%s2632_s3 + $0x88] sm:$0xff]   ;;  %v1807_v56 = vld [vmem:[%s2632_s3 + $0x90] sm:$0xff]   ;;  %v1808_v57 = vld [vmem:[%s2632_s3 + $0x58] sm:$0xff]   ;;  %s1962_s7 = scalar_lea.vmem %s1961_s29, 2048  ;;  %p1963_p1 = scmp.lt.s32.totalorder %s2576_s15, %s1961_s29 }
  0x21   : > { %549 = vmatpush1.bf16.msra.mxu0 %v1776_v19  ;;  %622 = vmatpush1.bf16.msra.mxu1 %v1777_v20  ;;  %v1809_v58 = vld [vmem:[%s2632_s3 + $0xd8] sm:$0xff]   ;;  %v1812_v61 = vld [vmem:[%s2632_s3 + $0x60] sm:$0xff]   ;;  %v1816_v1 = vld [vmem:[%s2632_s3 + $0x68] sm:$0xff]   ;;  %v374_v19 = vsub.s32 3, %v361_v14  ;;  %p1959_p0 = pneg %p1958_p13  ;;  %p1964_p2 = scmp.lt.s32.totalorder %s1962_s7, %s1956_s24 }
  0x22   : > { %550 = vmatprep.subr.bf16.mxu0 %v1778_v21  ;;  %623 = vmatprep.subr.bf16.mxu1 %v1780_v22  ;;  %v1810_v59 = vld [vmem:[%s2632_s3 + $0x18] sm:$0xff]   ;;  %v1813_v62 = vld [vmem:[%s2632_s3 + $0xe0] sm:$0xff]   ;;  %v1818_v3 = vld [vmem:[%s2632_s3 + $0x28] sm:$0xff]  }
  0x23   : > { %v1811_v60 = vld [vmem:[%s2632_s3 + $0x98] sm:$0xff]   ;;  %v1814_v63 = vld [vmem:[%s2632_s3 + $0x20] sm:$0xff]   ;;  %v1819_v4 = vld [vmem:[%s2632_s3 + $0xa8] sm:$0xff]   ;;  %p1965_p3 = por %p1964_p2, %p1963_p1 }
  0x24   : > { %v1815_v0 = vld [vmem:[%s2632_s3 + $0xa0] sm:$0xff]   ;;  %v1820_v5 = vld [vmem:[%s2632_s3 + $0x70] sm:$0xff]   ;;  %v1824_v9 = vld [vmem:[%s2632_s3 + $0x78] sm:$0xff]  }
  0x25   : > { %551 = vmatpush1.bf16.msra.mxu0 %v1782_v23  ;;  %624 = vmatpush1.bf16.msra.mxu1 %v1783_v24  ;;  %v1821_v6 = vld [vmem:[%s2632_s3 + $0xf0] sm:$0xff]   ;;  %v1825_v10 = vld [vmem:[%s2632_s3 + $0xf8] sm:$0xff]   ;;  %v358_v17 = vld [vmem:[%s2631_s2] sm:$0xf]  ;;  %p1966_p5 = pnand %p1965_p3, %p1959_p0 }
  0x26   : > { %552 = vmatprep.subr.bf16.mxu0 %v1784_v25  ;;  %625 = vmatprep.subr.bf16.mxu1 %v1786_v26  ;;  %v1822_v7 = vld [vmem:[%s2632_s3 + $0x30] sm:$0xff]   ;;  %v1826_v11 = vld [vmem:[%s2632_s3 + $0x38] sm:$0xff]   ;;  %v2342_v20 = vrot.slane %v358_v17, %v362_v15  ;;  %v2344_v21 = vrot.slane %v358_v17, %v370_v16  ;;  %v2346_v22 = vrot.slane %v358_v17, %v366_v18 }
  0x27   : > { %v1823_v8 = vld [vmem:[%s2632_s3 + $0xb0] sm:$0xff]   ;;  %v1827_v12 = vld [vmem:[%s2632_s3 + $0xb8] sm:$0xff]   ;;  %v2348_v23 = vrot.slane %v358_v17, %v374_v19 }
  0x29   : > { %553 = vmatpush1.bf16.msra.mxu0 %v1788_v27  ;;  %626 = vmatpush1.bf16.msra.mxu1 %v1789_v28 }
  0x2a   : > { %554 = vmatprep.subr.bf16.mxu0 %v1790_v29  ;;  %627 = vmatprep.subr.bf16.mxu1 %v1792_v30 }
  0x2d   : > { %555 = vmatpush1.bf16.msra.mxu0 %v1794_v31  ;;  %628 = vmatpush1.bf16.msra.mxu1 %v1795_v32 }
  0x2e   : > { %1610 = vmatprep.subr.bf16.mxu0 %v1796_v45  ;;  %1650 = vmatprep.subr.bf16.mxu1 %v1797_v46 }
  0x30   : > { %573 = vmatmul.mubr.bf16.vlgmr.msra.gmra.mrb[0].mxu0 %v322_v35  ;;  %646 = vmatmul.mubr.bf16.vlgmr.msra.gmra.mrb[0].mxu1 %v322_v35 }
  0x31   : > { %582 = vmatprep.mubr.bf16.mxu0 %v2036_v2  ;;  %655 = vmatprep.mubr.bf16.mxu1 %v2036_v2 }
  0x32   : > { %1611 = vmatpush3.bf16.msra.mxu0 %v1798_v47  ;;  %1651 = vmatpush3.bf16.msra.mxu1 %v1799_v48 }
  0x33   : > { %1612 = vmatprep.subr.bf16.mxu0 %v1800_v49  ;;  %1652 = vmatprep.subr.bf16.mxu1 %v1801_v50 }
  0x36   : > { %1613 = vmatpush3.bf16.msra.mxu0 %v1802_v51  ;;  %1653 = vmatpush3.bf16.msra.mxu1 %v1803_v52 }
  0x37   : > { %1614 = vmatprep.subr.bf16.mxu0 %v1804_v53  ;;  %1654 = vmatprep.subr.bf16.mxu1 %v1805_v54 }
  0x38   : > { %583 = vmatmul.mubr.bf16.gmra.mrb[4].mxu0 %v323_v38  ;;  %656 = vmatmul.mubr.bf16.gmra.mrb[4].mxu1 %v323_v38 }
  0x39   : > { %592 = vmatprep.mubr.bf16.mxu0 %v2036_v2  ;;  %665 = vmatprep.mubr.bf16.mxu1 %v2036_v2 }
  0x3a   : > { %1615 = vmatpush3.bf16.msra.mxu0 %v1806_v55  ;;  %1655 = vmatpush3.bf16.msra.mxu1 %v1807_v56 }
  0x3b   : > { %1616 = vmatprep.subr.bf16.mxu0 %v1808_v57  ;;  %1656 = vmatprep.subr.bf16.mxu1 %v1809_v58 }
  0x3e   : > { %1617 = vmatpush3.bf16.msra.mxu0 %v1810_v59  ;;  %1657 = vmatpush3.bf16.msra.mxu1 %v1811_v60 }
  0x3f   : > { %1618 = vmatprep.subr.bf16.mxu0 %v1812_v61  ;;  %1658 = vmatprep.subr.bf16.mxu1 %v1813_v62 }
  0x40   : > { %593 = vmatmul.mubr.bf16.gmra.mrb[8].mxu0 %v324_v41  ;;  %666 = vmatmul.mubr.bf16.gmra.mrb[8].mxu1 %v324_v41 }
  0x41   : > { %602 = vmatprep.mubr.bf16.mxu0 %v2036_v2  ;;  %675 = vmatprep.mubr.bf16.mxu1 %v2036_v2  ;;  %v1817_v2 = vld [vmem:[%s2632_s3 + $0xe8] sm:$0xff]  }
  0x42   : > { %1619 = vmatpush3.bf16.msra.mxu0 %v1814_v63  ;;  %1659 = vmatpush3.bf16.msra.mxu1 %v1815_v0 }
  0x43   : > { %1620 = vmatprep.subr.bf16.mxu0 %v1816_v1  ;;  %1660 = vmatprep.subr.bf16.mxu1 %v1817_v2 }
  0x46   : > { %1621 = vmatpush3.bf16.msra.mxu0 %v1818_v3  ;;  %1661 = vmatpush3.bf16.msra.mxu1 %v1819_v4 }
  0x47   : > { %1622 = vmatprep.subr.bf16.mxu0 %v1820_v5  ;;  %1662 = vmatprep.subr.bf16.mxu1 %v1821_v6 }
  0x48   : > { %603 = vmatmul.mubr.bf16.gmra.mrb[12].mxu0 %v325_v44  ;;  %676 = vmatmul.mubr.bf16.gmra.mrb[12].mxu1 %v325_v44 }
  0x4a   : > { %1623 = vmatpush3.bf16.msra.mxu0 %v1822_v7  ;;  %1663 = vmatpush3.bf16.msra.mxu1 %v1823_v8 }
  0x4b   : > { %1624 = vmatprep.subr.bf16.mxu0 %v1824_v9  ;;  %1664 = vmatprep.subr.bf16.mxu1 %v1825_v10 }
  0x4e   : > { %1625 = vmatpush3.bf16.msra.mxu0 %v1826_v11  ;;  %1665 = vmatpush3.bf16.msra.mxu1 %v1827_v12 }
 0x103   : > { %v574_v24 = vpop.f32.mrb[0].mxu0  ;;  %v647_v25 = vpop.f32.mrb[0].mxu1 }
 0x104   : > { %v2351_v26 = vadd.f32 %v574_v24, %v2342_v20  ;;  %v2354_v27 = vadd.f32 %v647_v25, %v2344_v21  ;;  %v576_v28 = vpop.f32.mrb[1].mxu0  ;;  %v649_v29 = vpop.f32.mrb[1].mxu1 }
 0x105   : > { %v2357_v30 = vadd.f32 %v576_v28, %v2346_v22  ;;  %v2360_v31 = vadd.f32 %v649_v29, %v2348_v23  ;;  %v578_v32 = vpop.f32.mrb[2].mxu0  ;;  %v651_v33 = vpop.f32.mrb[2].mxu1 }
 0x106   : > { %v1539_v34 = vmul.f32 -1.442695, %v2351_v26  ;;  %v1541_v35 = vmul.f32 -1.442695, %v2354_v27  ;;  %v2365_v36 = vadd.f32 %v578_v32, %v2342_v20  ;;  %v2368_v37 = vadd.f32 %v651_v33, %v2344_v21  ;;  %v580_v38 = vpop.f32.mrb[3].mxu0  ;;  %v653_v39 = vpop.f32.mrb[3].mxu1 }
 0x107   : > { %v1540_v40 = vmul.f32 -1.442695, %v2357_v30  ;;  %v1542_v41 = vmul.f32 -1.442695, %v2360_v31  ;;  %v2373_v42 = vadd.f32 %v580_v38, %v2346_v22  ;;  %v2376_v43 = vadd.f32 %v653_v39, %v2348_v23 }
 0x108   : > { %1828 = vpow2.f32 %v1539_v34  ;;  %v1543_v44 = vmul.f32 -1.442695, %v2365_v36  ;;  %v1545_v45 = vmul.f32 -1.442695, %v2368_v37 }
 0x109   : > { %1830 = vpow2.f32 %v1541_v35  ;;  %v1544_v46 = vmul.f32 -1.442695, %v2373_v42  ;;  %v1546_v47 = vmul.f32 -1.442695, %v2376_v43 }
 0x10a   : > { %1832 = vpow2.f32 %v1540_v40 }
 0x10b   : > { %1834 = vpow2.f32 %v1542_v41  ;;  %v584_v48 = vpop.f32.mrb[4].mxu0  ;;  %v657_v49 = vpop.f32.mrb[4].mxu1 }
 0x10c   : > { %1836 = vpow2.f32 %v1543_v44  ;;  %v2383_v50 = vadd.f32 %v584_v48, %v2342_v20  ;;  %v2386_v51 = vadd.f32 %v657_v49, %v2344_v21  ;;  %v586_v52 = vpop.f32.mrb[5].mxu0  ;;  %v659_v53 = vpop.f32.mrb[5].mxu1 }
 0x10d   : > { %1838 = vpow2.f32 %v1545_v45  ;;  %v2389_v54 = vadd.f32 %v586_v52, %v2346_v22  ;;  %v2392_v55 = vadd.f32 %v659_v53, %v2348_v23  ;;  %v588_v56 = vpop.f32.mrb[6].mxu0  ;;  %v661_v57 = vpop.f32.mrb[6].mxu1 }
 0x10e   : > { %1840 = vpow2.f32 %v1544_v46  ;;  %v1547_v58 = vmul.f32 -1.442695, %v2383_v50  ;;  %v1549_v59 = vmul.f32 -1.442695, %v2386_v51  ;;  %v2397_v60 = vadd.f32 %v588_v56, %v2342_v20  ;;  %v590_v61 = vpop.f32.mrb[7].mxu0  ;;  %v663_v62 = vpop.f32.mrb[7].mxu1 }
 0x10f   : > { %1842 = vpow2.f32 %v1546_v47  ;;  %v1548_v63 = vmul.f32 -1.442695, %v2389_v54  ;;  %v1550_v0 = vmul.f32 -1.442695, %v2392_v55  ;;  %v2403_v24 = vadd.f32 %v661_v57, %v2344_v21 }
 0x110   : > { %1844 = vpow2.f32 %v1547_v58  ;;  %v1551_v1 = vmul.f32 -1.442695, %v2397_v60  ;;  %v2406_v32 = vadd.f32 %v590_v61, %v2346_v22  ;;  %v2410_v44 = vadd.f32 %v663_v62, %v2348_v23 }
 0x111   : > { %1846 = vpow2.f32 %v1549_v59  ;;  %v1553_v41 = vmul.f32 -1.442695, %v2403_v24 }
 0x112   : > { %v1829_v2 = vpop.eup %1828  ;;  %1848 = vpow2.f32 %v1548_v63  ;;  %v1552_v48 = vmul.f32 -1.442695, %v2406_v32 }
 0x113   : > { %v1831_v3 = vpop.eup %1830  ;;  %v782_v4 = vadd.f32 1.0, %v1829_v2  ;;  %1850 = vpow2.f32 %v1550_v0  ;;  %v594_v5 = vpop.f32.mrb[8].mxu0 }
 0x114   : > { %v667_v6 = vpop.f32.mrb[8].mxu1  ;;  %v1833_v7 = vpop.eup %1832  ;;  %v784_v8 = vadd.f32 1.0, %v1831_v3  ;;  %1852 = vpow2.f32 %v1551_v1  ;;  %v2414_v49 = vadd.f32 %v594_v5, %v2342_v20 }
 0x115   : > { %v596_v9 = vpop.f32.mrb[9].mxu0  ;;  %v669_v10 = vpop.f32.mrb[9].mxu1  ;;  %1854 = vrcp.f32 %v782_v4  ;;  %v783_v12 = vadd.f32 1.0, %v1833_v7  ;;  %v2419_v58 = vadd.f32 %v667_v6, %v2344_v21 }
 0x116   : > { %v1835_v11 = vpop.eup %1834  ;;  %v598_v13 = vpop.f32.mrb[10].mxu0  ;;  %1856 = vrcp.f32 %v784_v8  ;;  %v2422_v59 = vadd.f32 %v596_v9, %v2346_v22  ;;  %v2429_v1 = vadd.f32 %v669_v10, %v2348_v23 }
 0x117   : > { %v671_v14 = vpop.f32.mrb[10].mxu1  ;;  %v1837_v15 = vpop.eup %1836  ;;  %v785_v16 = vadd.f32 1.0, %v1835_v11  ;;  %1858 = vrcp.f32 %v783_v12  ;;  %v2432_v2 = vadd.f32 %v598_v13, %v2342_v20  ;;  %v1554_v11 = vmul.f32 -1.442695, %v2410_v44 }
 0x118   : > { %v600_v17 = vpop.f32.mrb[11].mxu0  ;;  %v1839_v18 = vpop.eup %1838  ;;  %v786_v19 = vadd.f32 1.0, %v1837_v15  ;;  %v2439_v7 = vadd.f32 %v671_v14, %v2344_v21  ;;  %v1555_v13 = vmul.f32 -1.442695, %v2414_v49  ;;  %v1557_v15 = vmul.f32 -1.442695, %v2419_v58 }
 0x119   : > { %v673_v25 = vpop.f32.mrb[11].mxu1  ;;  %v1841_v28 = vpop.eup %1840  ;;  %1860 = vrcp.f32 %v785_v16  ;;  %v788_v29 = vadd.f32 1.0, %v1839_v18  ;;  %v2442_v8 = vadd.f32 %v600_v17, %v2346_v22  ;;  %v1556_v14 = vmul.f32 -1.442695, %v2422_v59 }
 0x11a   : > { %v1843_v33 = vpop.eup %1842  ;;  %1862 = vrcp.f32 %v786_v19  ;;  %v787_v34 = vadd.f32 1.0, %v1841_v28  ;;  %v1558_v18 = vmul.f32 -1.442695, %v2429_v1  ;;  %v2452_v17 = vadd.f32 %v673_v25, %v2348_v23 }
 0x11b   : > { %v1845_v35 = vpop.eup %1844  ;;  %1864 = vrcp.f32 %v788_v29  ;;  %v789_v38 = vadd.f32 1.0, %v1843_v33  ;;  %v604_v45 = vpop.f32.mrb[12].mxu0  ;;  %v1559_v28 = vmul.f32 -1.442695, %v2432_v2  ;;  %v1561_v29 = vmul.f32 -1.442695, %v2439_v7 }
 0x11c   : > { %v1847_v39 = vpop.eup %1846  ;;  %1866 = vrcp.f32 %v787_v34  ;;  %v790_v40 = vadd.f32 1.0, %v1845_v35  ;;  %v677_v52 = vpop.f32.mrb[12].mxu1  ;;  %v1560_v33 = vmul.f32 -1.442695, %v2442_v8 }
 0x11d   : > { %v1849_v46 = vpop.eup %1848  ;;  %1868 = vrcp.f32 %v789_v38  ;;  %v792_v47 = vadd.f32 1.0, %v1847_v39  ;;  %v2416_v53 = vpop.f32.mrb[13].mxu0  ;;  %v2460_v39 = vadd.f32 %v604_v45, %v2342_v20 }
 0x11e   : > { %v1851_v56 = vpop.eup %1850  ;;  %1870 = vrcp.f32 %v790_v40  ;;  %v791_v57 = vadd.f32 1.0, %v1849_v46  ;;  %v2424_v61 = vpop.f32.mrb[13].mxu1  ;;  %v2465_v46 = vadd.f32 %v677_v52, %v2344_v21 }
 0x11f   : > { %v2426_v62 = vpop.f32.mrb[14].mxu0  ;;  %v1853_v63 = vpop.eup %1852  ;;  %1872 = vrcp.f32 %v792_v47  ;;  %v793_v0 = vadd.f32 1.0, %v1851_v56 }
 0x120   : > { %v2434_v3 = vpop.f32.mrb[14].mxu1  ;;  %v2436_v4 = vpop.f32.mrb[15].mxu0  ;;  %1874 = vrcp.f32 %v791_v57  ;;  %v794_v6 = vadd.f32 1.0, %v1853_v63 }
 0x121   : > { %v1855_v5 = vpop.eup %1854  ;;  %v2444_v9 = vpop.f32.mrb[15].mxu1  ;;  %1876 = vrcp.f32 %v793_v0 }
 0x122   : > { %v1857_v10 = vpop.eup %1856  ;;  %1878 = vrcp.f32 %v794_v6  ;;  %v878_v35 = vmul.f32 %v1855_v5, %v2351_v26 }
 0x123   : > { %v1859_v12 = vpop.eup %1858  ;;  %1880 = vpow2.f32 %v1553_v41  ;;  %v880_v25 = vmul.f32 %v1857_v10, %v2354_v27 }
 0x124   : > { %v1861_v16 = vpop.eup %1860  ;;  %1882 = vpow2.f32 %v1552_v48  ;;  %v879_v48 = vmul.f32 %v1859_v12, %v2357_v30  ;;  %v1563_v30 = vmul.f32 -1.442695, %v2460_v39 }
 0x125   : > { %v1863_v19 = vpop.eup %1862  ;;  %1884 = vpow2.f32 %v1554_v11  ;;  %v881_v45 = vmul.f32 %v1861_v16, %v2360_v31  ;;  %v1565_v31 = vmul.f32 -1.442695, %v2465_v46 }
 0x126   : > { %v1865_v34 = vpop.eup %1864  ;;  %v882_v38 = vmul.f32 %v1863_v19, %v2365_v36  ;;  %1886 = vpow2.f32 %v1555_v13 }
 0x127   : > { %v1867_v40 = vpop.eup %1866  ;;  %v884_v41 = vmul.f32 %v1865_v34, %v2368_v37  ;;  %1888 = vpow2.f32 %v1557_v15  ;;  %v1562_v37 = vmul.f32 -1.442695, %v2452_v17 }
 0x128   : > { %v1869_v47 = vpop.eup %1868  ;;  %v918_v56 = vpack.c.bf16 %v882_v38, %v878_v35  ;;  %v883_v26 = vmul.f32 %v1867_v40, %v2373_v42  ;;  %1890 = vpow2.f32 %v1556_v14 }
 0x129   : > { %v1871_v36 = vpop.eup %1870  ;;  %v920_v57 = vpack.c.bf16 %v884_v41, %v880_v25  ;;  %v885_v63 = vmul.f32 %v1869_v47, %v2376_v43  ;;  %1892 = vpow2.f32 %v1558_v18  ;;  %v2490_v41 = vadd.f32 %v2416_v53, %v2346_v22 }
 0x12a   : > { %v2471_v27 = vpop.eup %1872  ;;  %v919_v52 = vpack.c.bf16 %v883_v26, %v879_v48  ;;  %1894 = vpow2.f32 %v1559_v28  ;;  %v2481_v10 = vmul.f32 %v1871_v36, %v2383_v50  ;;  %v2502_v53 = vadd.f32 %v2434_v3, %v2344_v21 }
 0x12b   : > { %v2474_v0 = vpop.eup %1874  ;;  %v921_v42 = vpack.c.bf16 %v885_v63, %v881_v45  ;;  %1896 = vpow2.f32 %v1561_v29  ;;  %v2498_v45 = vadd.f32 %v2426_v62, %v2342_v20  ;;  %v2512_v62 = vadd.f32 %v2444_v9, %v2348_v23 }
 0x12c   : > { %v2477_v5 = vpop.eup %1876  ;;  %1222 = vmatprep.mubr.bf16.mxu0 %v919_v52  ;;  %1898 = vpow2.f32 %v1560_v33  ;;  %v1564_v52 = vmul.f32 -1.442695, %v2490_v41  ;;  %v888_v21 = vmul.f32 %v2471_v27, %v2386_v51 }
 0x12d   : > { %v1879_v43 = vpop.eup %1878  ;;  %1287 = vmatprep.mubr.bf16.mxu1 %v921_v42  ;;  %1223 = vmatmul.mubr.bf16.vlgmr.msra.gmra.mrb[16].mxu0 %v918_v56  ;;  %1900 = vpow2.f32 %v1562_v37  ;;  %v2494_v56 = vadd.f32 %v2424_v61, %v2348_v23  ;;  %v2506_v37 = vadd.f32 %v2436_v4, %v2346_v22  ;;  %v1567_v22 = vmul.f32 -1.442695, %v2498_v45 }
 0x12e   : > { %v1881_v6 = vpop.eup %1880  ;;  %v2484_v11 = vmul.f32 %v1879_v43, %v2397_v60  ;;  %1288 = vmatmul.mubr.bf16.vlgmr.msra.gmra.mrb[16].mxu1 %v920_v57  ;;  %1902 = vpow2.f32 %v1563_v30  ;;  %v889_v9 = vmul.f32 %v2477_v5, %v2392_v55 }
 0x12f   : > { %v1883_v12 = vpop.eup %1882  ;;  %v796_v13 = vadd.f32 1.0, %v1881_v6  ;;  %1904 = vpow2.f32 %v1565_v31  ;;  %v1566_v20 = vmul.f32 -1.442695, %v2494_v56  ;;  %v887_v31 = vmul.f32 %v2474_v0, %v2389_v54 }
 0x130   : > { %v1885_v15 = vpop.eup %1884  ;;  %v795_v16 = vadd.f32 1.0, %v1883_v12  ;;  %v922_v14 = vpack.c.bf16 %v2484_v11, %v2481_v10  ;;  %v1569_v6 = vmul.f32 -1.442695, %v2502_v53  ;;  %v1568_v12 = vmul.f32 -1.442695, %v2506_v37 }
 0x131   : > { %v1887_v18 = vpop.eup %1886  ;;  %1906 = vrcp.f32 %v796_v13  ;;  %v797_v19 = vadd.f32 1.0, %v1885_v15  ;;  %v1570_v13 = vmul.f32 -1.442695, %v2512_v62 }
 0x132   : > { %v1889_v28 = vpop.eup %1888  ;;  %1908 = vrcp.f32 %v795_v16  ;;  %v798_v50 = vadd.f32 1.0, %v1887_v18 }
 0x133   : > { %v1891_v29 = vpop.eup %1890  ;;  %1910 = vrcp.f32 %v797_v19  ;;  %v800_v60 = vadd.f32 1.0, %v1889_v28 }
 0x134   : > { %v1893_v33 = vpop.eup %1892  ;;  %1912 = vrcp.f32 %v798_v50  ;;  %v799_v34 = vadd.f32 1.0, %v1891_v29 }
 0x135   : > { %v1895_v35 = vpop.eup %1894  ;;  %1914 = vrcp.f32 %v800_v60  ;;  %v801_v38 = vadd.f32 1.0, %v1893_v33 }
 0x136   : > { %v1897_v40 = vpop.eup %1896  ;;  %1916 = vrcp.f32 %v799_v34  ;;  %v802_v25 = vadd.f32 1.0, %v1895_v35 }
 0x137   : > { %v1899_v47 = vpop.eup %1898  ;;  %1918 = vrcp.f32 %v801_v38  ;;  %v804_v48 = vadd.f32 1.0, %v1897_v40 }
 0x138   : > { %v1901_v26 = vpop.eup %1900  ;;  %1920 = vrcp.f32 %v802_v25  ;;  %v803_v36 = vadd.f32 1.0, %v1899_v47 }
 0x139   : > { %v1903_v57 = vpop.eup %1902  ;;  %1922 = vrcp.f32 %v804_v48  ;;  %v805_v63 = vadd.f32 1.0, %v1901_v26 }
 0x13a   : > { %v1905_v61 = vpop.eup %1904  ;;  %1924 = vrcp.f32 %v803_v36  ;;  %v806_v33 = vadd.f32 1.0, %v1903_v57 }
 0x13b   : > { %v1907_v30 = vpop.eup %1906  ;;  %1926 = vrcp.f32 %v805_v63 }
 0x13c   : > { %v1909_v42 = vpop.eup %1908  ;;  %v892_v3 = vmul.f32 %v1907_v30, %v2403_v24  ;;  %1928 = vpow2.f32 %v1564_v52 }
 0x13d   : > { %v1911_v4 = vpop.eup %1910  ;;  %v891_v43 = vmul.f32 %v1909_v42, %v2406_v32  ;;  %1930 = vpow2.f32 %v1566_v20 }
 0x13e   : > { %v1913_v23 = vpop.eup %1912  ;;  %v893_v51 = vmul.f32 %v1911_v4, %v2410_v44  ;;  %v924_v24 = vpack.c.bf16 %v892_v3, %v888_v21  ;;  %1932 = vpow2.f32 %v1567_v22 }
 0x13f   : > { %v1915_v27 = vpop.eup %1914  ;;  %v923_v15 = vpack.c.bf16 %v891_v43, %v887_v31  ;;  %1934 = vpow2.f32 %v1569_v6  ;;  %v894_v44 = vmul.f32 %v1913_v23, %v2414_v49 }
 0x140   : > { %v1917_v54 = vpop.eup %1916  ;;  %v925_v32 = vpack.c.bf16 %v893_v51, %v889_v9  ;;  %1936 = vpow2.f32 %v1568_v12  ;;  %v896_v19 = vmul.f32 %v1915_v27, %v2419_v58 }
 0x141   : > { %v1919_v0 = vpop.eup %1918  ;;  %1230 = vmatprep.mubr.bf16.mxu0 %v923_v15  ;;  %1938 = vpow2.f32 %v1570_v13  ;;  %v895_v29 = vmul.f32 %v1917_v54, %v2422_v59 }
 0x142   : > { %v1921_v16 = vpop.eup %1920  ;;  %1295 = vmatprep.mubr.bf16.mxu1 %v925_v32  ;;  %1231 = vmatmul.mubr.bf16.gmra.mrb[20].mxu0 %v922_v14  ;;  %v897_v11 = vmul.f32 %v1919_v0, %v2429_v1  ;;  %v808_v14 = vadd.f32 1.0, %v1905_v61  ;;  %1940 = vrcp.f32 %v806_v33 }
 0x143   : > { %v1923_v55 = vpop.eup %1922  ;;  %v898_v5 = vmul.f32 %v1921_v16, %v2432_v2  ;;  %1296 = vmatmul.mubr.bf16.gmra.mrb[20].mxu1 %v924_v24 }
 0x144   : > { %v1925_v18 = vpop.eup %1924  ;;  %v900_v28 = vmul.f32 %v1923_v55, %v2439_v7  ;;  %1942 = vrcp.f32 %v808_v14 }
 0x145   : > { %v1927_v50 = vpop.eup %1926  ;;  %v899_v60 = vmul.f32 %v1925_v18, %v2442_v8  ;;  %v926_v10 = vpack.c.bf16 %v898_v5, %v894_v44 }
 0x146   : > { %v901_v49 = vmul.f32 %v1927_v50, %v2452_v17  ;;  %v928_v2 = vpack.c.bf16 %v900_v28, %v896_v19  ;;  %v1929_v35 = vpop.eup %1928 }
 0x147   : > { %v927_v34 = vpack.c.bf16 %v899_v60, %v895_v29  ;;  %v1931_v40 = vpop.eup %1930  ;;  %v807_v58 = vadd.f32 1.0, %v1929_v35 }
 0x148   : > { %v929_v38 = vpack.c.bf16 %v901_v49, %v897_v11  ;;  %v1933_v7 = vpop.eup %1932  ;;  %v809_v59 = vadd.f32 1.0, %v1931_v40 }
 0x149   : > { %1238 = vmatprep.mubr.bf16.mxu0 %v927_v34  ;;  %v1935_v8 = vpop.eup %1934  ;;  %1944 = vrcp.f32 %v807_v58  ;;  %v810_v25 = vadd.f32 1.0, %v1933_v7 }
 0x14a   : > { %1303 = vmatprep.mubr.bf16.mxu1 %v929_v38  ;;  %1239 = vmatmul.mubr.bf16.gmra.mrb[24].mxu0 %v926_v10  ;;  %v1937_v1 = vpop.eup %1936  ;;  %1946 = vrcp.f32 %v809_v59  ;;  %v812_v17 = vadd.f32 1.0, %v1935_v8 }
 0x14b   : > { %1304 = vmatmul.mubr.bf16.gmra.mrb[24].mxu1 %v928_v2  ;;  %v1939_v47 = vpop.eup %1938  ;;  %1948 = vrcp.f32 %v810_v25  ;;  %v811_v48 = vadd.f32 1.0, %v1937_v1 }
 0x14c   : > { %1950 = vrcp.f32 %v812_v17  ;;  %v813_v26 = vadd.f32 1.0, %v1939_v47  ;;  %v1941_v36 = vpop.eup %1940 }
 0x14d   : > { %1952 = vrcp.f32 %v811_v48  ;;  %v902_v20 = vmul.f32 %v1941_v36, %v2460_v39 }
 0x14e   : > { %1954 = vrcp.f32 %v813_v26  ;;  %v1943_v57 = vpop.eup %1942 }
 0x14f   : > { %v904_v3 = vmul.f32 %v1943_v57, %v2465_v46 }
 0x153   : > { %v1945_v63 = vpop.eup %1944 }
 0x154   : > { %v1947_v61 = vpop.eup %1946  ;;  %v903_v31 = vmul.f32 %v1945_v63, %v2490_v41 }
 0x155   : > { %v1949_v52 = vpop.eup %1948  ;;  %v905_v12 = vmul.f32 %v1947_v61, %v2494_v56 }
 0x156   : > { %v1951_v30 = vpop.eup %1950  ;;  %v906_v42 = vmul.f32 %v1949_v52, %v2498_v45 }
 0x157   : > { %v1953_v21 = vpop.eup %1952  ;;  %v908_v22 = vmul.f32 %v1951_v30, %v2502_v53 }
 0x158   : > { %v1955_v4 = vpop.eup %1954  ;;  %v907_v43 = vmul.f32 %v1953_v21, %v2506_v37  ;;  %v930_v6 = vpack.c.bf16 %v906_v42, %v902_v20 }
 0x159   : > { %v909_v23 = vmul.f32 %v1955_v4, %v2512_v62  ;;  %v932_v39 = vpack.c.bf16 %v908_v22, %v904_v3  ;;  %v2552_v62 = vld [vmem:[%s2633_s4] ss:$0 sm:$0xff] }
 0x15a   : > { %v931_v9 = vpack.c.bf16 %v907_v43, %v903_v31 }
 0x15b   : > { %v933_v45 = vpack.c.bf16 %v909_v23, %v905_v12 }
 0x15c   : > { %1246 = vmatprep.mubr.bf16.mxu0 %v931_v9 }
 0x15d   : > { %1311 = vmatprep.mubr.bf16.mxu1 %v933_v45  ;;  %1247 = vmatmul.mubr.bf16.gmra.mrb[28].mxu0 %v930_v6 }
 0x15e   : > { %1312 = vmatmul.mubr.bf16.gmra.mrb[28].mxu1 %v932_v39 }
 0x200   : > { %v1626_v46 = vpop.f32.mrb[16].mxu0 }
 0x201   : > { %v1666_v53 = vpop.f32.mrb[16].mxu1  ;;  %v1627_v51 = vpop.f32.mrb[17].mxu0 }
 0x202   : > { %v1628_v41 = vadd.f32 %v1627_v51, %v1626_v46  ;;  %v1667_v24 = vpop.f32.mrb[17].mxu1  ;;  %v1629_v37 = vpop.f32.mrb[18].mxu0 }
 0x203   : > { %v1668_v56 = vadd.f32 %v1667_v24, %v1666_v53  ;;  %v1669_v27 = vpop.f32.mrb[18].mxu1  ;;  %v1630_v13 = vpop.f32.mrb[19].mxu0 }
 0x204   : > { %v1631_v15 = vadd.f32 %v1630_v13, %v1629_v37  ;;  %v1670_v54 = vpop.f32.mrb[19].mxu1 }
 0x205   : > { %v1290_v32 = vadd.f32 %v1668_v56, %v1628_v41  ;;  %v1671_v0 = vadd.f32 %v1670_v54, %v1669_v27 }
 0x207   : > { %v1354_v16 = vadd.f32 %v2552_v62, %v1290_v32  ;;  %v1293_v55 = vadd.f32 %v1671_v0, %v1631_v15 }
 0x209   : > { %1362 = vst [vmem:[%s2555_s13] sm:$0xff] %v1354_v16  ;;  %v1355_v44 = vadd.f32 %v2552_v62, %v1293_v55 }
 0x20b   : > { %1363 = vst [vmem:[%s2555_s13 + $0x8] sm:$0xff] %v1355_v44 }
 0x215   : > { %v1632_v5 = vpop.f32.mrb[20].mxu0 }
 0x216   : > { %v1672_v18 = vpop.f32.mrb[20].mxu1  ;;  %v1633_v19 = vpop.f32.mrb[21].mxu0 }
 0x217   : > { %v1634_v28 = vadd.f32 %v1633_v19, %v1632_v5  ;;  %v1673_v50 = vpop.f32.mrb[21].mxu1  ;;  %v1635_v29 = vpop.f32.mrb[22].mxu0 }
 0x218   : > { %v1674_v60 = vadd.f32 %v1673_v50, %v1672_v18  ;;  %v1675_v33 = vpop.f32.mrb[22].mxu1  ;;  %v1636_v10 = vpop.f32.mrb[23].mxu0 }
 0x219   : > { %v1637_v11 = vadd.f32 %v1636_v10, %v1635_v29  ;;  %v1676_v49 = vpop.f32.mrb[23].mxu1 }
 0x21a   : > { %v1298_v14 = vadd.f32 %v1674_v60, %v1634_v28  ;;  %v1677_v2 = vadd.f32 %v1676_v49, %v1675_v33 }
 0x21c   : > { %v1356_v34 = vadd.f32 %v2552_v62, %v1298_v14  ;;  %v1301_v35 = vadd.f32 %v1677_v2, %v1637_v11 }
 0x21d   : > { %v1638_v38 = vpop.f32.mrb[24].mxu0 }
 0x21e   : > { %1364 = vst [vmem:[%s2555_s13 + $0x10] sm:$0xff] %v1356_v34  ;;  %v1357_v40 = vadd.f32 %v2552_v62, %v1301_v35  ;;  %v1678_v58 = vpop.f32.mrb[24].mxu1  ;;  %v1639_v7 = vpop.f32.mrb[25].mxu0 }
 0x21f   : > { %v1640_v59 = vadd.f32 %v1639_v7, %v1638_v38  ;;  %v1679_v8 = vpop.f32.mrb[25].mxu1  ;;  %v1641_v25 = vpop.f32.mrb[26].mxu0 }
 0x220   : > { %1365 = vst [vmem:[%s2555_s13 + $0x18] sm:$0xff] %v1357_v40  ;;  %v1680_v1 = vadd.f32 %v1679_v8, %v1678_v58  ;;  %v1681_v17 = vpop.f32.mrb[26].mxu1  ;;  %v1642_v47 = vpop.f32.mrb[27].mxu0 }
 0x221   : > { %v1643_v48 = vadd.f32 %v1642_v47, %v1641_v25  ;;  %v1682_v26 = vpop.f32.mrb[27].mxu1 }
 0x222   : > { %v1306_v36 = vadd.f32 %v1680_v1, %v1640_v59  ;;  %v1683_v57 = vadd.f32 %v1682_v26, %v1681_v17 }
 0x224   : > { %v1358_v63 = vadd.f32 %v2552_v62, %v1306_v36  ;;  %v1309_v61 = vadd.f32 %v1683_v57, %v1643_v48 }
 0x226   : > { %1366 = vst [vmem:[%s2555_s13 + $0x20] sm:$0xff] %v1358_v63  ;;  %v1359_v52 = vadd.f32 %v2552_v62, %v1309_v61 }
 0x228   : > { %1367 = vst [vmem:[%s2555_s13 + $0x28] sm:$0xff] %v1359_v52 }
 0x230   : > { %v1644_v30 = vpop.f32.mrb[28].mxu0 }
 0x231   : > { %v1684_v20 = vpop.f32.mrb[28].mxu1  ;;  %v1645_v42 = vpop.f32.mrb[29].mxu0 }
 0x232   : > { %v1646_v21 = vadd.f32 %v1645_v42, %v1644_v30  ;;  %v1685_v3 = vpop.f32.mrb[29].mxu1  ;;  %v1647_v22 = vpop.f32.mrb[30].mxu0 }
 0x233   : > { %v1686_v4 = vadd.f32 %v1685_v3, %v1684_v20  ;;  %v1687_v31 = vpop.f32.mrb[30].mxu1  ;;  %v1648_v43 = vpop.f32.mrb[31].mxu0 }
 0x234   : > { %v1649_v6 = vadd.f32 %v1648_v43, %v1647_v22  ;;  %v1688_v12 = vpop.f32.mrb[31].mxu1 }
 0x235   : > { %v1314_v23 = vadd.f32 %v1686_v4, %v1646_v21  ;;  %v1689_v39 = vadd.f32 %v1688_v12, %v1687_v31 }
 0x237   : > { %v1360_v9 = vadd.f32 %v2552_v62, %v1314_v23  ;;  %v1317_v45 = vadd.f32 %v1689_v39, %v1649_v6 }
 0x239   : > { %1368 = vst [vmem:[%s2555_s13 + $0x30] sm:$0xff] %v1360_v9  ;;  %v1361_v46 = vadd.f32 %v2552_v62, %v1317_v45 }
 0x23b   : > { %1369 = vst [vmem:[%s2555_s13 + $0x38] sm:$0xff] %v1361_v46 }
 0x23c   : > { %1969 = shalt.err (!%p1966_p5)
}
 0x23d   : > { %s1970_s27 = scalar_lea.hbm %s2574_s12, 1024  ;;  %s1974_s10 = scalar_lea.hbm %s2634_s5, 4096 }
 0x23e   : > { %p1971_p6 = scmp.ne.s32.totalorder %s2574_s12, %s1970_s27  ;;  %p1975_p10 = scmp.lt.u32.totalorder %s2574_s12, %s2634_s5 }
 0x23f   : > { %p1976_p11 = scmp.lt.u32.totalorder %s1974_s10, %s1970_s27  ;;  %p1978_p13 = scmp.lt.u32.totalorder %s1970_s27, %s2574_s12 }
 0x240   : > { %p1972_p7 = pnand %p1971_p6, %p2110_p4 }
 0x241   : > { %p1977_p12 = por %p1976_p11, %p1975_p10 }
 0x242   : > { %p1973_p9 = pneg %p1972_p7 }
 0x243   : > { %p1979_p0 = por %p1978_p13, %p1977_p12 }
 0x245   : > { %p1980_p1 = pnand %p1979_p0, %p1973_p9 }
 0x247   : > { %1983 = shalt.err (!%p1980_p1)
}
 0x248   : > { %s2038_s14 = smov 128   ;;  %s2039_s16 = smov 8  }
 0x249   : > { %1690 = dma.vmem_to_hbm [thread:$0]  (%p2110_p4), %s2576_s15, 1024, %s2574_s12, %s2583_s21, %s2038_s14, %s2038_s14, %s2039_s16  }
 0x24a PF: > { %p1696_p2 = scmp.ge.s32.totalorder %s2034_s23, 2  ;;  %s1399_s17 = sand.u32 1, %s2014_s18  }
 0x24b   : > { %s1400_s24 = scalar_lea.sflag [#allocation4], %s1399_s17 }
 0x24c   : > { %p1693_p3 = pnand %p1696_p2, %p2117_p8 }
 0x24e   : > { %2009 = dma.done.wait (!%p1693_p3), %s1400_s24, 1024  }
 0x24f   : > { %2011 = vsyncadd (!%p1693_p3), %s1400_s24, 4294966272  ;;  %s18_s23 = sadd.s32 1, %s2034_s23   ;;  %s2637_s18 = smov %s2018_s19 }
 0x250   : > { %p15_p5 = scmp.ge.s32.totalorder %s18_s23, 6   ;;  %s2638_s19 = smov %s2022_s20 }
 0x251   : > { %s2639_s20 = smov %s2123_s6  ;;  %s2640_s21 = smov %s2030_s22 }
 0x252   : > { %s2641_s22 = smov %s2643_s26  ;;  %17 = sbr.rel (!%p15_p5) target bundleno = 4 (0x4), region = 92 }
 0x259   :  { %1405 = vsyncpa [#allocation4], 1 }
 0x25a   :  { %1407 = vsyncpa [#allocation4 + $0x1], 1 }

</bundles_post_ra>
